<compile_context>
chip_gen: v7x
topology: tpu7x:2x2x1
jax: 0.10.0
libtpu: 0.0.40
codegen_flags: <defaults>
</compile_context>

<pallas_src>
import functools

import jax
import jax.numpy as jnp
from jax.experimental import pallas as pl
from jax.experimental.pallas import tpu as pltpu


def _single_conv_kernel(xg_ref, w_ref, gamma_ref, beta_ref, o_ref, *, N, Cin, H, W, eps):
    """Fused ReflectionPad2d(1) + 3x3 conv + training-mode BN + ReLU (single step).

    xg_ref   : (N, Cin, PG) f32   image reflection-padded in H, flattened to
                                  q = hp*W + w, then zero-padded by L = W+1 flat
                                  positions on both ends (PG = (H+2)*W + 2*L).
    w_ref    : (Cout, 9*Cin) bf16 conv weights, tap-major (ky*3+kx), channel-minor.
    gamma_ref: (Cout, 1) f32      BN weight.
    beta_ref : (Cout, 1) f32      BN bias.
    o_ref    : (N, Cout, H*W) f32 output.
    """
    HW = H * W
    NHW = N * HW
    L = W + 1            # left zero-pad length of the flat axis
    base = L + W         # flat offset (inside xg) of output position (h=0, w=0)

    # w-coordinate of every fused lane position q = n*HW + h*W + w  (w = q mod W);
    # drives the ReflectionPad2d behaviour at the left/right image edges.
    q = jax.lax.broadcasted_iota(jnp.int32, (1, NHW), 1)
    wcol = (q & (W - 1)) if (W & (W - 1)) == 0 else (q % W)
    is_w0 = wcol == 0            # left image edge  (w == 0)
    is_wl = wcol == W - 1        # right image edge (w == W-1)

    def shifted(s):
        # (Cin, N*HW): batch-fused view x_flat[n, c, q_out + s] over all output
        # positions q_out.  Out-of-range flat positions land in the zero pad and are
        # only ever consumed behind a discarding select.  Batch pieces are joined at
        # lane-aligned offsets (multiples of HW).
        return jnp.concatenate(
            [xg_ref[n, :, base + s: base + s + HW] for n in range(N)], axis=-1)

    # Build the (9*Cin, N*HW) im2col slab as a VALUE (no VMEM scratch round trip);
    # taps ordered (ky, kx) row-major, each cast to bf16 as it enters the slab.
    taps = []
    for dy in (-1, 0, 1):                             # ky = 0, 1, 2
        row_m1 = shifted(dy * W - 1)                  # row h+dy, column w-1
        row_0 = shifted(dy * W)                       # row h+dy, column w
        row_p1 = shifted(dy * W + 1)                  # row h+dy, column w+1
        # ReflectionPad2d semantics at the W edges:
        #   w == 0   : column -1 reflects to column 1
        #   w == W-1 : column W  reflects to column W-2
        left = jnp.where(is_w0, row_p1, row_m1)       # kx = 0
        right = jnp.where(is_wl, row_m1, row_p1)      # kx = 2
        for tap in (left, row_0, right):
            taps.append(tap.astype(jnp.bfloat16))
    col = jnp.concatenate(taps, axis=0)               # (9*Cin, N*HW) bf16

    # ONE MXU matmul over the batch-fused lane axis: bf16 operands, f32 accumulation.
    y = jnp.dot(w_ref[...], col, preferred_element_type=jnp.float32)   # (Cout, NHW)

    # Training-mode BatchNorm statistics in a single pass (sum and sum-of-squares),
    # fused here so the conv activation never round-trips HBM.  Conv bias is omitted
    # on purpose: a per-channel constant cancels exactly through training-mode BN.
    inv_cnt = 1.0 / float(NHW)
    mean = jnp.sum(y, axis=-1, keepdims=True) * inv_cnt                 # (Cout, 1)
    meansq = jnp.sum(y * y, axis=-1, keepdims=True) * inv_cnt           # (Cout, 1)
    var = meansq - mean * mean                                          # biased variance
    scale = gamma_ref[...] * jax.lax.rsqrt(var + eps)                   # (Cout, 1)
    offset = beta_ref[...] - mean * scale                               # (Cout, 1)

    z = jnp.maximum(y * scale + offset, 0.0)                            # (Cout, NHW)
    for n in range(N):          # lane-aligned slices: n*HW is a multiple of 128
        o_ref[n] = z[:, n * HW:(n + 1) * HW].astype(o_ref.dtype)


def single_conv_forward(x, weight, bias, gamma, beta, eps=1e-5):
    """Forward of SingleConv: ReflectionPad2d(1) -> Conv2d(3x3) -> BatchNorm2d -> ReLU.

    x: (N, Cin, H, W) f32; weight: (Cout, Cin, 3, 3); bias/gamma/beta: (Cout,).
    Returns (N, Cout, H, W) f32.  `bias` is unused: it cancels exactly through
    training-mode BatchNorm.
    """
    del bias  # exactly cancels through training-mode BatchNorm
    N, Cin, H, W = x.shape
    Cout = weight.shape[0]
    P = (H + 2) * W
    HW = H * W
    L = W + 1
    PG = P + 2 * L

    # Reflection-pad H only (W reflection is handled in-kernel), flatten the spatial
    # axes, and zero-pad the flat axis so every conv tap is a static in-bounds slice.
    # All wrapper ops are layout-preserving (no NCHW<->NHWC transposes anywhere).
    xh = jnp.pad(x.astype(jnp.float32), ((0, 0), (0, 0), (1, 1), (0, 0)), mode="reflect")
    xg = jnp.pad(xh.reshape(N, Cin, P), ((0, 0), (0, 0), (L, L)))   # (N, Cin, PG)

    # (Cout, Cin, 3, 3) -> (Cout, ky, kx, Cin) -> (Cout, 9*Cin); bf16 MXU operand.
    w_mat = jnp.transpose(weight, (0, 2, 3, 1)).reshape(Cout, 9 * Cin).astype(jnp.bfloat16)
    gamma2 = gamma.reshape(Cout, 1).astype(jnp.float32)
    beta2 = beta.reshape(Cout, 1).astype(jnp.float32)

    kernel = functools.partial(_single_conv_kernel, N=N, Cin=Cin, H=H, W=W, eps=eps)

    # The whole problem is tiny, so it runs as a single fused grid step: one HBM read of
    # x, one HBM write of the result, no intermediate activation round-trips.
    y = pl.pallas_call(
        kernel,
        out_shape=jax.ShapeDtypeStruct((N, Cout, HW), jnp.float32),
        grid=(1,),
        in_specs=[
            pl.BlockSpec((N, Cin, PG), lambda i: (0, 0, 0)),
            pl.BlockSpec((Cout, 9 * Cin), lambda i: (0, 0)),
            pl.BlockSpec((Cout, 1), lambda i: (0, 0)),
            pl.BlockSpec((Cout, 1), lambda i: (0, 0)),
        ],
        out_specs=pl.BlockSpec((N, Cout, HW), lambda i: (0, 0, 0)),
        compiler_params=pltpu.CompilerParams(dimension_semantics=("arbitrary",)),
    )(xg, w_mat, gamma2, beta2)

    return y.reshape(N, Cout, H, W)


def _reference_forward(x, weight, bias, gamma, beta, eps=1e-5):
    """Pure-JAX reference mirroring the PyTorch module (training-mode BN)."""
    xp = jnp.pad(x, ((0, 0), (0, 0), (1, 1), (1, 1)), mode="reflect")
    y = jax.lax.conv_general_dilated(
        xp, weight, window_strides=(1, 1), padding="VALID",
        dimension_numbers=("NCHW", "OIHW", "NCHW"),
        precision=jax.lax.Precision.HIGHEST,
    ) + bias[None, :, None, None]
    mean = jnp.mean(y, axis=(0, 2, 3), keepdims=True)
    var = jnp.mean((y - mean) ** 2, axis=(0, 2, 3), keepdims=True)
    yhat = (y - mean) * jax.lax.rsqrt(var + eps)
    out = yhat * gamma[None, :, None, None] + beta[None, :, None, None]
    return jnp.maximum(out, 0.0)


if __name__ == "__main__":
    # Small shapes consistent with the module: batch=2, in=4, out=8, spatial 16x16.
    N, Cin, Cout, H, W = 2, 4, 8, 16, 16

    key = jax.random.PRNGKey(0)
    kx, kw, kb = jax.random.split(key, 3)
    x = jax.random.normal(kx, (N, Cin, H, W), dtype=jnp.float32)
    weight = jax.random.normal(kw, (Cout, Cin, 3, 3), dtype=jnp.float32) * 0.1
    bias = jax.random.normal(kb, (Cout,), dtype=jnp.float32) * 0.1
    gamma = jnp.ones((Cout,), dtype=jnp.float32)   # BN weight default
    beta = jnp.zeros((Cout,), dtype=jnp.float32)   # BN bias default

    out = jax.block_until_ready(single_conv_forward(x, weight, bias, gamma, beta))
    assert out.shape == (N, Cout, H, W)

    # Tight check: reference with the conv operands rounded to bf16 exactly like the
    # kernel's MXU inputs (accumulation is f32 in both).
    xb = x.astype(jnp.bfloat16).astype(jnp.float32)
    wb = weight.astype(jnp.bfloat16).astype(jnp.float32)
    ref_bf16 = _reference_forward(xb, wb, bias, gamma, beta)
    err_bf16 = float(jnp.max(jnp.abs(out - ref_bf16)))
    assert err_bf16 < 5e-3, f"mismatch vs bf16-consistent reference: {err_bf16}"

    # Sanity check vs pure-f32 module semantics (bf16 MXU operands -> looser tolerance).
    ref_f32 = _reference_forward(x, weight, bias, gamma, beta)
    err_f32 = float(jnp.max(jnp.abs(out - ref_f32)))
    assert err_f32 < 5e-2, f"mismatch vs f32 reference: {err_f32}"

    print("KERNEL_OK")
</pallas_src>

<mosaic_0001>
module attributes {stable_mosaic.version = 11 : i64} {
  func.func @_single_conv_kernel(%arg0: i32, %arg1: memref<2x4x322xf32, #tpu.memory_space<vmem>>, %arg2: memref<8x36xbf16, #tpu.memory_space<vmem>>, %arg3: memref<8x1xf32, #tpu.memory_space<vmem>>, %arg4: memref<8x1xf32, #tpu.memory_space<vmem>>, %arg5: memref<2x8x256xf32, #tpu.memory_space<vmem>>) attributes {dimension_semantics = [#tpu.dimension_semantics<arbitrary>], iteration_bounds = array<i64: 1>, scalar_prefetch = 0 : i64, scratch_operands = 0 : i64, tpu.core_type = #tpu.core_type<tc>, window_params = [{pipeline_mode = #tpu.pipeline_mode<synchronous>, transform_indices = @transform_0, window_bounds = array<i64: 2, 4, 322>}, {pipeline_mode = #tpu.pipeline_mode<synchronous>, transform_indices = @transform_1, window_bounds = array<i64: 8, 36>}, {pipeline_mode = #tpu.pipeline_mode<synchronous>, transform_indices = @transform_2, window_bounds = array<i64: 8, 1>}, {pipeline_mode = #tpu.pipeline_mode<synchronous>, transform_indices = @transform_3, window_bounds = array<i64: 8, 1>}, {pipeline_mode = #tpu.pipeline_mode<synchronous>, transform_indices = @transform_4, window_bounds = array<i64: 2, 8, 256>}]} {
    %0 = tpu.iota {dimensions = array<i32: 1>} : vector<1x512xi32>
    %c15_i32 = arith.constant 15 : i32
    %1 = vector.broadcast %c15_i32 : i32 to vector<1x512xi32>
    %2 = arith.andi %0, %1 : vector<1x512xi32>
    %c0_i32 = arith.constant 0 : i32
    %3 = vector.broadcast %c0_i32 : i32 to vector<1x512xi32>
    %4 = arith.cmpi eq, %2, %3 : vector<1x512xi32>
    %c15_i32_0 = arith.constant 15 : i32
    %5 = vector.broadcast %c15_i32_0 : i32 to vector<1x512xi32>
    %6 = arith.cmpi eq, %2, %5 : vector<1x512xi32>
    %c0 = arith.constant 0 : index
    %c0_1 = arith.constant 0 : index
    %c16 = arith.constant 16 : index
    %7 = vector.load %arg1[%c0, %c0_1, %c16] : memref<2x4x322xf32, #tpu.memory_space<vmem>>, vector<1x4x256xf32>
    %8 = vector.shape_cast %7 : vector<1x4x256xf32> to vector<4x256xf32>
    %c1 = arith.constant 1 : index
    %c0_2 = arith.constant 0 : index
    %c16_3 = arith.constant 16 : index
    %9 = vector.load %arg1[%c1, %c0_2, %c16_3] : memref<2x4x322xf32, #tpu.memory_space<vmem>>, vector<1x4x256xf32>
    %10 = vector.shape_cast %9 : vector<1x4x256xf32> to vector<4x256xf32>
    %11 = tpu.concatenate %8, %10 in 1 : vector<4x256xf32>, vector<4x256xf32> -> vector<4x512xf32>
    %c0_4 = arith.constant 0 : index
    %c0_5 = arith.constant 0 : index
    %c17 = arith.constant 17 : index
    %12 = vector.load %arg1[%c0_4, %c0_5, %c17] : memref<2x4x322xf32, #tpu.memory_space<vmem>>, vector<1x4x256xf32>
    %13 = vector.shape_cast %12 : vector<1x4x256xf32> to vector<4x256xf32>
    %c1_6 = arith.constant 1 : index
    %c0_7 = arith.constant 0 : index
    %c17_8 = arith.constant 17 : index
    %14 = vector.load %arg1[%c1_6, %c0_7, %c17_8] : memref<2x4x322xf32, #tpu.memory_space<vmem>>, vector<1x4x256xf32>
    %15 = vector.shape_cast %14 : vector<1x4x256xf32> to vector<4x256xf32>
    %16 = tpu.concatenate %13, %15 in 1 : vector<4x256xf32>, vector<4x256xf32> -> vector<4x512xf32>
    %c0_9 = arith.constant 0 : index
    %c0_10 = arith.constant 0 : index
    %c18 = arith.constant 18 : index
    %17 = vector.load %arg1[%c0_9, %c0_10, %c18] : memref<2x4x322xf32, #tpu.memory_space<vmem>>, vector<1x4x256xf32>
    %18 = vector.shape_cast %17 : vector<1x4x256xf32> to vector<4x256xf32>
    %c1_11 = arith.constant 1 : index
    %c0_12 = arith.constant 0 : index
    %c18_13 = arith.constant 18 : index
    %19 = vector.load %arg1[%c1_11, %c0_12, %c18_13] : memref<2x4x322xf32, #tpu.memory_space<vmem>>, vector<1x4x256xf32>
    %20 = vector.shape_cast %19 : vector<1x4x256xf32> to vector<4x256xf32>
    %21 = tpu.concatenate %18, %20 in 1 : vector<4x256xf32>, vector<4x256xf32> -> vector<4x512xf32>
    %22 = vector.shape_cast %4 : vector<1x512xi1> to vector<1x512xi1>
    %23 = vector.broadcast %22 : vector<1x512xi1> to vector<4x512xi1>
    %24 = arith.select %23, %21, %11 : vector<4x512xi1>, vector<4x512xf32>
    %25 = vector.shape_cast %6 : vector<1x512xi1> to vector<1x512xi1>
    %26 = vector.broadcast %25 : vector<1x512xi1> to vector<4x512xi1>
    %27 = arith.select %26, %11, %21 : vector<4x512xi1>, vector<4x512xf32>
    %28 = arith.truncf %24 : vector<4x512xf32> to vector<4x512xbf16>
    %29 = arith.truncf %16 : vector<4x512xf32> to vector<4x512xbf16>
    %30 = arith.truncf %27 : vector<4x512xf32> to vector<4x512xbf16>
    %c0_14 = arith.constant 0 : index
    %c0_15 = arith.constant 0 : index
    %c32 = arith.constant 32 : index
    %31 = vector.load %arg1[%c0_14, %c0_15, %c32] : memref<2x4x322xf32, #tpu.memory_space<vmem>>, vector<1x4x256xf32>
    %32 = vector.shape_cast %31 : vector<1x4x256xf32> to vector<4x256xf32>
    %c1_16 = arith.constant 1 : index
    %c0_17 = arith.constant 0 : index
    %c32_18 = arith.constant 32 : index
    %33 = vector.load %arg1[%c1_16, %c0_17, %c32_18] : memref<2x4x322xf32, #tpu.memory_space<vmem>>, vector<1x4x256xf32>
    %34 = vector.shape_cast %33 : vector<1x4x256xf32> to vector<4x256xf32>
    %35 = tpu.concatenate %32, %34 in 1 : vector<4x256xf32>, vector<4x256xf32> -> vector<4x512xf32>
    %c0_19 = arith.constant 0 : index
    %c0_20 = arith.constant 0 : index
    %c33 = arith.constant 33 : index
    %36 = vector.load %arg1[%c0_19, %c0_20, %c33] : memref<2x4x322xf32, #tpu.memory_space<vmem>>, vector<1x4x256xf32>
    %37 = vector.shape_cast %36 : vector<1x4x256xf32> to vector<4x256xf32>
    %c1_21 = arith.constant 1 : index
    %c0_22 = arith.constant 0 : index
    %c33_23 = arith.constant 33 : index
    %38 = vector.load %arg1[%c1_21, %c0_22, %c33_23] : memref<2x4x322xf32, #tpu.memory_space<vmem>>, vector<1x4x256xf32>
    %39 = vector.shape_cast %38 : vector<1x4x256xf32> to vector<4x256xf32>
    %40 = tpu.concatenate %37, %39 in 1 : vector<4x256xf32>, vector<4x256xf32> -> vector<4x512xf32>
    %c0_24 = arith.constant 0 : index
    %c0_25 = arith.constant 0 : index
    %c34 = arith.constant 34 : index
    %41 = vector.load %arg1[%c0_24, %c0_25, %c34] : memref<2x4x322xf32, #tpu.memory_space<vmem>>, vector<1x4x256xf32>
    %42 = vector.shape_cast %41 : vector<1x4x256xf32> to vector<4x256xf32>
    %c1_26 = arith.constant 1 : index
    %c0_27 = arith.constant 0 : index
    %c34_28 = arith.constant 34 : index
    %43 = vector.load %arg1[%c1_26, %c0_27, %c34_28] : memref<2x4x322xf32, #tpu.memory_space<vmem>>, vector<1x4x256xf32>
    %44 = vector.shape_cast %43 : vector<1x4x256xf32> to vector<4x256xf32>
    %45 = tpu.concatenate %42, %44 in 1 : vector<4x256xf32>, vector<4x256xf32> -> vector<4x512xf32>
    %46 = vector.shape_cast %4 : vector<1x512xi1> to vector<1x512xi1>
    %47 = vector.broadcast %46 : vector<1x512xi1> to vector<4x512xi1>
    %48 = arith.select %47, %45, %35 : vector<4x512xi1>, vector<4x512xf32>
    %49 = vector.shape_cast %6 : vector<1x512xi1> to vector<1x512xi1>
    %50 = vector.broadcast %49 : vector<1x512xi1> to vector<4x512xi1>
    %51 = arith.select %50, %35, %45 : vector<4x512xi1>, vector<4x512xf32>
    %52 = arith.truncf %48 : vector<4x512xf32> to vector<4x512xbf16>
    %53 = arith.truncf %40 : vector<4x512xf32> to vector<4x512xbf16>
    %54 = arith.truncf %51 : vector<4x512xf32> to vector<4x512xbf16>
    %c0_29 = arith.constant 0 : index
    %c0_30 = arith.constant 0 : index
    %c48 = arith.constant 48 : index
    %55 = vector.load %arg1[%c0_29, %c0_30, %c48] : memref<2x4x322xf32, #tpu.memory_space<vmem>>, vector<1x4x256xf32>
    %56 = vector.shape_cast %55 : vector<1x4x256xf32> to vector<4x256xf32>
    %c1_31 = arith.constant 1 : index
    %c0_32 = arith.constant 0 : index
    %c48_33 = arith.constant 48 : index
    %57 = vector.load %arg1[%c1_31, %c0_32, %c48_33] : memref<2x4x322xf32, #tpu.memory_space<vmem>>, vector<1x4x256xf32>
    %58 = vector.shape_cast %57 : vector<1x4x256xf32> to vector<4x256xf32>
    %59 = tpu.concatenate %56, %58 in 1 : vector<4x256xf32>, vector<4x256xf32> -> vector<4x512xf32>
    %c0_34 = arith.constant 0 : index
    %c0_35 = arith.constant 0 : index
    %c49 = arith.constant 49 : index
    %60 = vector.load %arg1[%c0_34, %c0_35, %c49] : memref<2x4x322xf32, #tpu.memory_space<vmem>>, vector<1x4x256xf32>
    %61 = vector.shape_cast %60 : vector<1x4x256xf32> to vector<4x256xf32>
    %c1_36 = arith.constant 1 : index
    %c0_37 = arith.constant 0 : index
    %c49_38 = arith.constant 49 : index
    %62 = vector.load %arg1[%c1_36, %c0_37, %c49_38] : memref<2x4x322xf32, #tpu.memory_space<vmem>>, vector<1x4x256xf32>
    %63 = vector.shape_cast %62 : vector<1x4x256xf32> to vector<4x256xf32>
    %64 = tpu.concatenate %61, %63 in 1 : vector<4x256xf32>, vector<4x256xf32> -> vector<4x512xf32>
    %c0_39 = arith.constant 0 : index
    %c0_40 = arith.constant 0 : index
    %c50 = arith.constant 50 : index
    %65 = vector.load %arg1[%c0_39, %c0_40, %c50] : memref<2x4x322xf32, #tpu.memory_space<vmem>>, vector<1x4x256xf32>
    %66 = vector.shape_cast %65 : vector<1x4x256xf32> to vector<4x256xf32>
    %c1_41 = arith.constant 1 : index
    %c0_42 = arith.constant 0 : index
    %c50_43 = arith.constant 50 : index
    %67 = vector.load %arg1[%c1_41, %c0_42, %c50_43] : memref<2x4x322xf32, #tpu.memory_space<vmem>>, vector<1x4x256xf32>
    %68 = vector.shape_cast %67 : vector<1x4x256xf32> to vector<4x256xf32>
    %69 = tpu.concatenate %66, %68 in 1 : vector<4x256xf32>, vector<4x256xf32> -> vector<4x512xf32>
    %70 = vector.shape_cast %4 : vector<1x512xi1> to vector<1x512xi1>
    %71 = vector.broadcast %70 : vector<1x512xi1> to vector<4x512xi1>
    %72 = arith.select %71, %69, %59 : vector<4x512xi1>, vector<4x512xf32>
    %73 = vector.shape_cast %6 : vector<1x512xi1> to vector<1x512xi1>
    %74 = vector.broadcast %73 : vector<1x512xi1> to vector<4x512xi1>
    %75 = arith.select %74, %59, %69 : vector<4x512xi1>, vector<4x512xf32>
    %76 = arith.truncf %72 : vector<4x512xf32> to vector<4x512xbf16>
    %77 = arith.truncf %64 : vector<4x512xf32> to vector<4x512xbf16>
    %78 = arith.truncf %75 : vector<4x512xf32> to vector<4x512xbf16>
    %79 = tpu.concatenate %28, %29, %30, %52, %53, %54, %76, %77, %78 in 0 : vector<4x512xbf16>, vector<4x512xbf16>, vector<4x512xbf16>, vector<4x512xbf16>, vector<4x512xbf16>, vector<4x512xbf16>, vector<4x512xbf16>, vector<4x512xbf16>, vector<4x512xbf16> -> vector<36x512xbf16>
    %c0_44 = arith.constant 0 : index
    %c0_45 = arith.constant 0 : index
    %80 = vector.load %arg2[%c0_44, %c0_45] : memref<8x36xbf16, #tpu.memory_space<vmem>>, vector<8x36xbf16>
    %cst = arith.constant dense<0.000000e+00> : vector<8x512xf32>
    %81 = tpu.matmul %80, %79, %cst {dimension_numbers = #tpu.dot_dimension_numbers<[1], [0], [0], [1], [0, 0, 1, 1], [], []>} : vector<8x36xbf16>, vector<36x512xbf16>, vector<8x512xf32> -> vector<8x512xf32>
    %cst_46 = arith.constant dense<0.000000e+00> : vector<8xf32>
    %82 = vector.multi_reduction <add>, %81, %cst_46 [1] : vector<8x512xf32> to vector<8xf32>
    %83 = vector.shape_cast %82 : vector<8xf32> to vector<8x1xf32>
    %cst_47 = arith.constant 0.001953125 : f32
    %84 = vector.broadcast %cst_47 : f32 to vector<8x1xf32>
    %85 = arith.mulf %83, %84 : vector<8x1xf32>
    %86 = arith.mulf %81, %81 : vector<8x512xf32>
    %cst_48 = arith.constant dense<0.000000e+00> : vector<8xf32>
    %87 = vector.multi_reduction <add>, %86, %cst_48 [1] : vector<8x512xf32> to vector<8xf32>
    %88 = vector.shape_cast %87 : vector<8xf32> to vector<8x1xf32>
    %cst_49 = arith.constant 0.001953125 : f32
    %89 = vector.broadcast %cst_49 : f32 to vector<8x1xf32>
    %90 = arith.mulf %88, %89 : vector<8x1xf32>
    %91 = arith.mulf %85, %85 : vector<8x1xf32>
    %92 = arith.subf %90, %91 : vector<8x1xf32>
    %c0_50 = arith.constant 0 : index
    %c0_51 = arith.constant 0 : index
    %93 = vector.load %arg3[%c0_50, %c0_51] : memref<8x1xf32, #tpu.memory_space<vmem>>, vector<8x1xf32>
    %cst_52 = arith.constant 9.99999974E-6 : f32
    %94 = vector.broadcast %cst_52 : f32 to vector<8x1xf32>
    %95 = arith.addf %92, %94 : vector<8x1xf32>
    %96 = math.rsqrt %95 : vector<8x1xf32>
    %97 = arith.mulf %93, %96 : vector<8x1xf32>
    %c0_53 = arith.constant 0 : index
    %c0_54 = arith.constant 0 : index
    %98 = vector.load %arg4[%c0_53, %c0_54] : memref<8x1xf32, #tpu.memory_space<vmem>>, vector<8x1xf32>
    %99 = arith.mulf %85, %97 : vector<8x1xf32>
    %100 = arith.subf %98, %99 : vector<8x1xf32>
    %101 = vector.broadcast %97 : vector<8x1xf32> to vector<8x512xf32>
    %102 = arith.mulf %81, %101 : vector<8x512xf32>
    %103 = vector.broadcast %100 : vector<8x1xf32> to vector<8x512xf32>
    %104 = arith.addf %102, %103 : vector<8x512xf32>
    %cst_55 = arith.constant 0.000000e+00 : f32
    %105 = vector.broadcast %cst_55 : f32 to vector<8x512xf32>
    %106 = arith.maximumf %104, %105 : vector<8x512xf32>
    %107 = vector.extract_strided_slice %106 {offsets = [0, 0], sizes = [8, 256], strides = [1, 1]} : vector<8x512xf32> to vector<8x256xf32>
    %c0_56 = arith.constant 0 : index
    %c0_57 = arith.constant 0 : index
    %c0_58 = arith.constant 0 : index
    %108 = vector.load %arg5[%c0_56, %c0_57, %c0_58] : memref<2x8x256xf32, #tpu.memory_space<vmem>>, vector<1x8x256xf32>
    %109 = vector.shape_cast %108 : vector<1x8x256xf32> to vector<8x256xf32>
    %110 = vector.shape_cast %107 : vector<8x256xf32> to vector<1x8x256xf32>
    tpu.vector_store %arg5[%c0_56, %c0_57, %c0_58], %110 {strides = array<i32>} : memref<2x8x256xf32, #tpu.memory_space<vmem>>, vector<1x8x256xf32>,
    %111 = vector.extract_strided_slice %106 {offsets = [0, 256], sizes = [8, 256], strides = [1, 1]} : vector<8x512xf32> to vector<8x256xf32>
    %c1_59 = arith.constant 1 : index
    %c0_60 = arith.constant 0 : index
    %c0_61 = arith.constant 0 : index
    %112 = vector.load %arg5[%c1_59, %c0_60, %c0_61] : memref<2x8x256xf32, #tpu.memory_space<vmem>>, vector<1x8x256xf32>
    %113 = vector.shape_cast %112 : vector<1x8x256xf32> to vector<8x256xf32>
    %114 = vector.shape_cast %111 : vector<8x256xf32> to vector<1x8x256xf32>
    tpu.vector_store %arg5[%c1_59, %c0_60, %c0_61], %114 {strides = array<i32>} : memref<2x8x256xf32, #tpu.memory_space<vmem>>, vector<1x8x256xf32>,
    return
  }
  func.func @transform_0(%arg0: i32) -> (i32, i32, i32) {
    %c0_i32 = arith.constant 0 : i32
    %c0_i32_0 = arith.constant 0 : i32
    %c0_i32_1 = arith.constant 0 : i32
    %c0_i32_2 = arith.constant 0 : i32
    return %c0_i32, %c0_i32_0, %c0_i32_1 : i32, i32, i32
  }
  func.func @transform_1(%arg0: i32) -> (i32, i32) {
    %c0_i32 = arith.constant 0 : i32
    %c0_i32_0 = arith.constant 0 : i32
    %c0_i32_1 = arith.constant 0 : i32
    return %c0_i32, %c0_i32_0 : i32, i32
  }
  func.func @transform_2(%arg0: i32) -> (i32, i32) {
    %c0_i32 = arith.constant 0 : i32
    %c0_i32_0 = arith.constant 0 : i32
    %c0_i32_1 = arith.constant 0 : i32
    return %c0_i32, %c0_i32_0 : i32, i32
  }
  func.func @transform_3(%arg0: i32) -> (i32, i32) {
    %c0_i32 = arith.constant 0 : i32
    %c0_i32_0 = arith.constant 0 : i32
    %c0_i32_1 = arith.constant 0 : i32
    return %c0_i32, %c0_i32_0 : i32, i32
  }
  func.func @transform_4(%arg0: i32) -> (i32, i32, i32) {
    %c0_i32 = arith.constant 0 : i32
    %c0_i32_0 = arith.constant 0 : i32
    %c0_i32_1 = arith.constant 0 : i32
    %c0_i32_2 = arith.constant 0 : i32
    return %c0_i32, %c0_i32_0, %c0_i32_1 : i32, i32, i32
  }
}

</mosaic_0001>

<bundles_post_ra>
// kernel: tpu_custom_call.1
= control target key start
LH: loop header
LB: loop body
LE: loop exit
PB: predicated region body
PF: predicated region fallthrough
CT: control target
= control target key end

     0   :  { %9 = vsyncpa [#allocation3], 0  ;;  %s1082_s0 = inlined_call_operand.hbm [shape: f32[2,4,322], index: 0, kind: input, shape index: {}]   ;;  %s1083_s1 = inlined_call_operand.vmem [shape: bf16[8,36], index: 1, kind: input, shape index: {}]   ;;  %s1084_s2 = inlined_call_operand.vmem [shape: f32[8,1], index: 2, kind: input, shape index: {}]   ;;  %s1085_s3 = inlined_call_operand.vmem [shape: f32[8,1], index: 3, kind: input, shape index: {}]   ;;  %s1086_s4 = inlined_call_operand.hbm [shape: f32[2,8,256], index: 4, kind: output, shape index: {}]  }
   0x1   :  { %10 = vsyncpa [#allocation4], 0  ;;  %s818_s15 = smov [#allocation2]   ;;  %s770_s19 = scalar_lea.hbm %s1082_s0, 384 }
   0x2   :  { %s16_s16 = sshll.u32 %s818_s15, 4  ;;  %p771_p0 = scmp.ne.s32.totalorder %s1082_s0, %s770_s19  ;;  %s17_s16 = int_to_ptr.vmem [resolvable:$true] %s16_s16 }
   0x3   :  { %p774_p1 = scmp.lt.u32.totalorder %s770_s19, %s1082_s0 }
   0x5   :  { %p776_p2 = pnand %p774_p1, %p771_p0 }
   0x7   :  { %779 = shalt.err (!%p776_p2)
}
   0x8   :  { %s780_s24 = scalar_lea.vmem %s17_s16, 384  ;;  %p785_p4 = scmp.lt.s32.totalorder %s17_s16, %s17_s16 }
   0x9   :  { %p781_p3 = scmp.ne.s32.totalorder %s17_s16, %s780_s24  ;;  %p786_p5 = scmp.lt.s32.totalorder %s780_s24, %s780_s24 }
   0xb   :  { %p787_p6 = por %p786_p5, %p785_p4 }
   0xd   :  { %p788_p7 = pnand %p787_p6, %p781_p3 }
   0xf   :  { %791 = shalt.err (!%p788_p7)
}
  0x10   :  { %s819_s25 = smov 192   ;;  %s820_s26 = smov 12  }
  0x11   :  { %22 = dma.hbm_to_vmem [thread:$0]  %s1082_s0, 384, %s17_s16, [#allocation3], %s819_s25, %s819_s25, %s820_s26  }
  0x12   :  { %814 = dma.done.wait [#allocation3], 384  }
  0x13   :  { %815 = vsyncadd [#allocation3], 4294966912  ;;  %v50_v0 = vld [vmem:[#allocation2] sm:$0xff]  ;;  %v51_v1 = vld [vmem:[#allocation2 + $0x8] sm:$0xf]  ;;  %s821_s29 = smov 110   ;;  %v33_v10 = vlaneseq }
  0x14   :  { %v53_v2 = vld [vmem:[#allocation2 + $0xc] sm:$0xff]  ;;  %v57_v3 = vcombine.high %v50_v0, %v50_v0  ;;  %s822_s30 = smov 112   ;;  %s823_s5 = smov 111   ;;  %v54_v7 = vld [vmem:[#allocation2 + $0x14] sm:$0xf]  ;;  %v830_v9 = vmov 0  }
  0x15   :  { %v71_v4 = vcombine.high %v53_v2, %v53_v2  ;;  %s824_s6 = smov 94   ;;  %s825_s0 = smov 96   ;;  %v684_v8 = vpack.i.bf16 %v53_v2, %v54_v7  ;;  %490 = vmatprep.mubr.bf16.mxu0 %v830_v9  ;;  %531 = vmatprep.mubr.bf16.mxu1 %v830_v9  ;;  %v34_v11 = vand.u32 127, %v33_v10  ;;  %vm88_vm0 = vcmask 908288  }
  0x16   :  { %v639_v5 = vpack.i.bf16 %v51_v1, %v57_v3  ;;  %s826_s7 = smov 80   ;;  %s827_s8 = smov 78   ;;  %764 = vset.pattern.permute.xlu0 %v830_v9  ;;  %765 = vset.pattern.permute.xlu1 %v830_v9  ;;  %vm109_vm1 = vcmask 900096   ;;  %vm64_vm2 = vcmask 916480   ;;  %vm1087_vm5 = vcmask 769024  }
  0x17   :  { %v644_v6 = vpack.i.bf16 %v71_v4, %v50_v0  ;;  %s828_s9 = smov 95   ;;  %s829_s10 = smov 79   ;;  %v35_v12 = vadd.s32 128, %v34_v11  ;;  %v38_v24 = vand.u32 15, %v34_v11  ;;  %vm166_vm6 = vcmask 785408  }
  0x18   :  { %640 = vrot.lane.b32.xlu1 %v639_v5, %s821_s29  ;;  %630 = vrot.lane.b32.xlu0 %v639_v5, %s822_s30  ;;  %v36_v38 = vadd.s32 256, %v34_v11  ;;  %v37_v39 = vadd.s32 384, %v34_v11  ;;  %vm1088_vm9 = vcmask 1041408   ;;  %vm1089_vm10 = vcmask 1043456   ;;  %s831_s16 = smov [#allocation5]  }
  0x19   :  { %v39_v15 = vand.u32 15, %v35_v12  ;;  %vm891_vm7 = vcmp.eq.s32.totalorder %v38_v24, 15  ;;  %vm895_vm8 = vcmp.eq.s32.totalorder %v38_v24, 0  ;;  %vm396_vm11 = vcmask 1045504   ;;  %s597_s17 = sshll.u32 %s831_s16, 4  ;;  %s598_s17 = int_to_ptr.vmem [resolvable:$true] %s597_s17 }
  0x1a   :  { %v40_v59 = vand.u32 15, %v36_v38  ;;  %v41_v60 = vand.u32 15, %v37_v39  ;;  %p797_p9 = scmp.lt.s32.totalorder %s598_s17, %s598_s17 }
  0x1b   :  { %vm874_vm3 = vcmp.eq.s32.totalorder %v39_v15, 15  ;;  %vm878_vm4 = vcmp.eq.s32.totalorder %v39_v15, 0 }
  0x1c   :  { %645 = vrot.lane.b32.xlu1 %v644_v6, %s822_s30  ;;  %635 = vrot.lane.b32.xlu0 %v639_v5, %s823_s5  ;;  %vm922_vm12 = vcmp.eq.s32.totalorder %v40_v59, 15  ;;  %vm926_vm13 = vcmp.eq.s32.totalorder %v41_v60, 15  ;;  %vm930_vm14 = vcmp.eq.s32.totalorder %v41_v60, 0  ;;  %vm940_vm15 = vcmp.eq.s32.totalorder %v40_v59, 0 }
  0x20   :  { %655 = vrot.lane.b32.xlu1 %v644_v6, %s821_s29  ;;  %650 = vrot.lane.b32.xlu0 %v644_v6, %s823_s5 }
  0x24   :  { %665 = vrot.lane.b32.xlu1 %v639_v5, %s824_s6  ;;  %660 = vrot.lane.b32.xlu0 %v639_v5, %s825_s0 }
  0x28   :  { %675 = vrot.lane.b32.xlu1 %v644_v6, %s824_s6  ;;  %670 = vrot.lane.b32.xlu0 %v644_v6, %s825_s0 }
  0x2c   :  { %685 = vrot.lane.b32.xlu1 %v684_v8, %s823_s5  ;;  %680 = vrot.lane.b32.xlu0 %v684_v8, %s822_s30 }
  0x30   :  { %695 = vrot.lane.b32.xlu1 %v684_v8, %s825_s0  ;;  %690 = vrot.lane.b32.xlu0 %v684_v8, %s821_s29 }
  0x34   :  { %705 = vrot.lane.b32.xlu1 %v639_v5, %s826_s7  ;;  %700 = vrot.lane.b32.xlu0 %v684_v8, %s824_s6 }
  0x38   :  { %715 = vrot.lane.b32.xlu1 %v644_v6, %s826_s7  ;;  %710 = vrot.lane.b32.xlu0 %v639_v5, %s827_s8 }
  0x3c   :  { %725 = vrot.lane.b32.xlu1 %v639_v5, %s828_s9  ;;  %720 = vrot.lane.b32.xlu0 %v644_v6, %s827_s8 }
  0x40   :  { %735 = vrot.lane.b32.xlu1 %v644_v6, %s828_s9  ;;  %730 = vrot.lane.b32.xlu0 %v639_v5, %s829_s10 }
  0x44   :  { %745 = vrot.lane.b32.xlu1 %v644_v6, %s829_s10  ;;  %740 = vrot.lane.b32.xlu0 %v684_v8, %s826_s7 }
  0x48   :  { %755 = vrot.lane.b32.xlu1 %v684_v8, %s828_s9  ;;  %750 = vrot.lane.b32.xlu0 %v684_v8, %s827_s8 }
  0x4c   :  { %760 = vrot.lane.b32.xlu0 %v684_v8, %s829_s10 }
  0x8a   :  { %v641_v13 = vpop.permute.xlu1 %640  ;;  %v631_v14 = vpop.permute.xlu0 %630 }
  0x8b   :  { %v643_v16 = vunpack.i.h.bf16 %v641_v13  ;;  %v642_v17 = vunpack.i.l.bf16 %v641_v13  ;;  %v633_v18 = vunpack.i.h.bf16 %v631_v14  ;;  %v632_v19 = vunpack.i.l.bf16 %v631_v14 }
  0x8d   :  { %v111_v28 = vsel %vm109_vm1, %v642_v17, %v643_v16  ;;  %v66_v29 = vsel %vm64_vm2, %v632_v19, %v633_v18 }
  0x8e   :  { %v871_v20 = vpop.permute.xlu1 %645  ;;  %v636_v21 = vpop.permute.xlu0 %635  ;;  %v133_v42 = vsel %vm878_vm4, %v111_v28, %v66_v29  ;;  %v145_v43 = vsel %vm874_vm3, %v66_v29, %v111_v28 }
  0x8f   :  { %v638_v22 = vunpack.i.h.bf16 %v636_v21  ;;  %v637_v23 = vunpack.i.l.bf16 %v636_v21  ;;  %v647_v30 = vunpack.i.l.bf16 %v871_v20  ;;  %v149_v53 = vpack.c.bf16 %v133_v42, %v133_v42 }
  0x90   :  { %v157_v54 = vpack.c.bf16 %v145_v43, %v145_v43  ;;  %v648_v12 = vunpack.i.h.bf16 %v871_v20 }
  0x91   :  { %v90_v25 = vsel %vm88_vm0, %v637_v23, %v638_v22  ;;  %v65_v44 = vsel %vm64_vm2, %v647_v30, %v632_v19 }
  0x92   :  { %v153_v31 = vpack.c.bf16 %v90_v25, %v90_v25  ;;  %v885_v32 = vpop.permute.xlu1 %655  ;;  %v887_v33 = vpop.permute.xlu0 %650  ;;  %v339_v7 = vrot.slane %v157_v54, 4 }
  0x93   :  { %v657_v34 = vunpack.i.l.bf16 %v885_v32  ;;  %v652_v35 = vunpack.i.l.bf16 %v887_v33  ;;  %v653_v29 = vunpack.i.h.bf16 %v887_v33 }
  0x94   :  { %v331_v45 = vrot.slane %v153_v31, 6 }
  0x95   :  { %v110_v40 = vsel %vm109_vm1, %v657_v34, %v642_v17  ;;  %v89_v41 = vsel %vm88_vm0, %v652_v35, %v637_v23  ;;  %v658_v35 = vunpack.i.h.bf16 %v885_v32 }
  0x96   :  { %v152_v46 = vpack.c.bf16 %v89_v41, %v89_v41  ;;  %v666_v47 = vpop.permute.xlu1 %665  ;;  %v661_v48 = vpop.permute.xlu0 %660  ;;  %v132_v55 = vsel %vm895_vm8, %v110_v40, %v65_v44  ;;  %v144_v56 = vsel %vm891_vm7, %v65_v44, %v110_v40  ;;  %v380_v0 = vsel %vm1088_vm9, %v149_v53, %v331_v45 }
  0x97   :  { %v668_v49 = vunpack.i.h.bf16 %v666_v47  ;;  %v667_v50 = vunpack.i.l.bf16 %v666_v47  ;;  %v663_v51 = vunpack.i.h.bf16 %v661_v48  ;;  %v662_v52 = vunpack.i.l.bf16 %v661_v48 }
  0x98   :  { %v330_v1 = vrot.slane %v152_v46, 6  ;;  %v148_v3 = vpack.c.bf16 %v132_v55, %v132_v55  ;;  %v156_v4 = vpack.c.bf16 %v144_v56, %v144_v56  ;;  %v391_v17 = vsel %vm1089_vm10, %v380_v0, %v339_v7 }
  0x99   :  { %v210_v57 = vsel %vm1087_vm5, %v667_v50, %v668_v49  ;;  %v168_v58 = vsel %vm166_vm6, %v662_v52, %v663_v51 }
  0x9a   :  { %v912_v61 = vpop.permute.xlu1 %675  ;;  %v914_v62 = vpop.permute.xlu0 %670  ;;  %v224_v63 = vsel %vm878_vm4, %v210_v57, %v168_v58  ;;  %v228_v18 = vsel %vm874_vm3, %v168_v58, %v210_v57  ;;  %v338_v21 = vrot.slane %v156_v4, 4  ;;  %v377_v22 = vsel %vm1088_vm9, %v148_v3, %v330_v1 }
  0x9b   :  { %v677_v2 = vunpack.i.l.bf16 %v912_v61  ;;  %v672_v5 = vunpack.i.l.bf16 %v914_v62  ;;  %v232_v6 = vpack.c.bf16 %v224_v63, %v224_v63  ;;  %v240_v38 = vpack.c.bf16 %v228_v18, %v228_v18 }
  0x9c   :  { %v678_v39 = vunpack.i.h.bf16 %v912_v61  ;;  %v673_v40 = vunpack.i.h.bf16 %v914_v62  ;;  %v389_v33 = vsel %vm1089_vm10, %v377_v22, %v338_v21  ;;  %vm291_vm9 = vcmask 637952  }
  0x9d   :  { %v209_v8 = vsel %vm1087_vm5, %v677_v2, %v667_v50  ;;  %v167_v13 = vsel %vm166_vm6, %v672_v5, %v662_v52  ;;  %v347_v16 = vrot.slane %v232_v6, 2  ;;  %vm249_vm5 = vcmask 654336  }
  0x9e   :  { %v686_v14 = vpop.permute.xlu1 %685  ;;  %v681_v15 = vpop.permute.xlu0 %680  ;;  %v223_v28 = vsel %vm895_vm8, %v209_v8, %v167_v13  ;;  %v227_v30 = vsel %vm891_vm7, %v167_v13, %v209_v8  ;;  %vm187_vm10 = vcmask 777216   ;;  %v965_v63 = vrot.slane %v240_v38, 6 }
  0x9f   :  { %v687_v19 = vunpack.i.l.bf16 %v686_v14  ;;  %v688_v24 = vunpack.i.h.bf16 %v686_v14  ;;  %v683_v20 = vunpack.i.h.bf16 %v681_v15  ;;  %v401_v25 = vsel %vm396_vm11, %v391_v17, %v347_v16 }
  0xa0   :  { %v682_v31 = vunpack.i.l.bf16 %v681_v15  ;;  %458 = vmatprep.subr.bf16.mxu0 %v401_v25  ;;  %v231_v34 = vpack.c.bf16 %v223_v28, %v223_v28  ;;  %v239_v46 = vpack.c.bf16 %v227_v30, %v227_v30 }
  0xa1   :  { %v100_v43 = vsel %vm88_vm0, %v653_v29, %v687_v19  ;;  %v99_v47 = vsel %vm88_vm0, %v688_v24, %v653_v29  ;;  %v78_v48 = vsel %vm64_vm2, %v683_v20, %v648_v12  ;;  %vm1106_vm0 = vcmask 769024  }
  0xa2   :  { %v696_v41 = vpop.permute.xlu1 %695  ;;  %v691_v42 = vpop.permute.xlu0 %690  ;;  %v346_v32 = vrot.slane %v231_v34, 2  ;;  %v79_v49 = vsel %vm64_vm2, %v648_v12, %v682_v31  ;;  %v155_v53 = vpack.c.bf16 %v100_v43, %v100_v43  ;;  %v154_v3 = vpack.c.bf16 %v99_v47, %v99_v47 }
  0xa3   :  { %v693_v44 = vunpack.i.h.bf16 %v691_v42  ;;  %v692_v45 = vunpack.i.l.bf16 %v691_v42  ;;  %v697_v50 = vunpack.i.l.bf16 %v696_v41  ;;  %v698_v4 = vunpack.i.h.bf16 %v696_v41 }
  0xa4   :  { %v398_v54 = vsel %vm396_vm11, %v389_v33, %v346_v32  ;;  %v333_v7 = vrot.slane %v155_v53, 6  ;;  %v977_v16 = vrot.slane %v239_v46, 6  ;;  %vm270_vm2 = vcmask 646144  }
  0xa5   :  { %v120_v51 = vsel %vm109_vm1, %v693_v44, %v658_v35  ;;  %v121_v52 = vsel %vm109_vm1, %v658_v35, %v692_v45  ;;  %459 = vmatpush1.bf16.msra.mxu0 %v398_v54  ;;  %v178_v5 = vsel %vm166_vm6, %v673_v40, %v697_v50  ;;  %vm1107_vm1 = vmmov %vm1106_vm0  ;;  %v332_v25 = vrot.slane %v154_v3, 6 }
  0xa6   :  { %v706_v55 = vpop.permute.xlu1 %705  ;;  %v701_v56 = vpop.permute.xlu0 %700  ;;  %v135_v57 = vsel %vm930_vm14, %v121_v52, %v79_v49  ;;  %v147_v58 = vsel %vm926_vm13, %v79_v49, %v121_v52  ;;  %v146_v2 = vsel %vm922_vm12, %v78_v48, %v120_v51  ;;  %v134_v15 = vsel %vm940_vm15, %v120_v51, %v78_v48 }
  0xa7   :  { %v708_v59 = vunpack.i.h.bf16 %v706_v55  ;;  %v707_v60 = vunpack.i.l.bf16 %v706_v55  ;;  %v703_v61 = vunpack.i.h.bf16 %v701_v56  ;;  %v702_v62 = vunpack.i.l.bf16 %v701_v56 }
  0xa8   :  { %v151_v0 = vpack.c.bf16 %v135_v57, %v135_v57  ;;  %v159_v1 = vpack.c.bf16 %v147_v58, %v147_v58  ;;  %v158_v19 = vpack.c.bf16 %v146_v2, %v146_v2  ;;  %v177_v28 = vsel %vm166_vm6, %v698_v4, %v673_v40 }
  0xa9   :  { %v220_v6 = vsel %vm1106_vm0, %v678_v39, %v702_v62  ;;  %v980_v17 = vsel %vm249_vm5, %v707_v60, %v708_v59  ;;  %v219_v18 = vsel %vm1107_vm1, %v703_v61, %v678_v39  ;;  %vm1108_vm0 = vcmask 1041408  }
  0xaa   :  { %v971_v8 = vpop.permute.xlu1 %715  ;;  %v711_v12 = vpop.permute.xlu0 %710  ;;  %v226_v13 = vsel %vm930_vm14, %v220_v6, %v178_v5  ;;  %v341_v14 = vrot.slane %v159_v1, 4  ;;  %v386_v20 = vsel %vm1108_vm0, %v151_v0, %v333_v7  ;;  %v150_v30 = vpack.c.bf16 %v134_v15, %v134_v15 }
  0xab   :  { %v713_v21 = vunpack.i.h.bf16 %v711_v12  ;;  %v712_v22 = vunpack.i.l.bf16 %v711_v12  ;;  %v234_v24 = vpack.c.bf16 %v226_v13, %v226_v13  ;;  %v717_v29 = vunpack.i.l.bf16 %v971_v8 }
  0xac   :  { %vm1109_vm1 = vcmask 1043456   ;;  %v225_v41 = vsel %vm940_vm15, %v219_v18, %v177_v28  ;;  %v340_v44 = vrot.slane %v158_v19, 4  ;;  %v997_v45 = vsel %vm922_vm12, %v177_v28, %v219_v18 }
  0xad   :  { %v293_v31 = vsel %vm291_vm9, %v712_v22, %v713_v21  ;;  %v349_v38 = vrot.slane %v234_v24, 2  ;;  %v395_v39 = vsel %vm1109_vm1, %v386_v20, %v341_v14  ;;  %v233_v47 = vpack.c.bf16 %v225_v41, %v225_v41  ;;  %vm1111_vm6 = vmmov %vm1109_vm1 }
  0xae   :  { %v726_v34 = vpop.permute.xlu1 %725  ;;  %v987_v35 = vpop.permute.xlu0 %720  ;;  %v307_v42 = vsel %vm878_vm4, %v293_v31, %v980_v17  ;;  %v1003_v48 = vsel %vm926_vm13, %v178_v5, %v220_v6  ;;  %v250_v32 = vsel %vm249_vm5, %v717_v29, %v707_v60  ;;  %vm1110_vm4 = vmmov %vm1108_vm0  ;;  %v241_v60 = vpack.c.bf16 %v997_v45, %v997_v45 }
  0xaf   :  { %v728_v43 = vunpack.i.h.bf16 %v726_v34  ;;  %v727_v40 = vunpack.i.l.bf16 %v726_v34  ;;  %v722_v33 = vunpack.i.l.bf16 %v987_v35  ;;  %v407_v46 = vsel %vm396_vm11, %v395_v39, %v349_v38 }
  0xb0   :  { %499 = vmatprep.subr.bf16.mxu1 %v407_v46  ;;  %v383_v49 = vsel %vm1110_vm4, %v150_v30, %v332_v25  ;;  %v315_v50 = vpack.c.bf16 %v307_v42, %v307_v42  ;;  %v348_v53 = vrot.slane %v233_v47, 2  ;;  %v242_v61 = vpack.c.bf16 %v1003_v48, %v1003_v48 }
  0xb1   :  { %v189_v27 = vsel %vm187_vm10, %v727_v40, %v728_v43  ;;  %v292_v52 = vsel %vm291_vm9, %v722_v33, %v712_v22  ;;  %v393_v57 = vsel %vm1111_vm6, %v383_v49, %v340_v44  ;;  %v718_v1 = vunpack.i.h.bf16 %v971_v8 }
  0xb2   :  { %v236_v51 = vpack.c.bf16 %v189_v27, %v189_v27  ;;  %v736_v54 = vpop.permute.xlu1 %735  ;;  %v731_v55 = vpop.permute.xlu0 %730  ;;  %v306_v56 = vsel %vm895_vm8, %v292_v52, %v250_v32  ;;  %v404_v62 = vsel %vm396_vm11, %v393_v57, %v348_v53  ;;  %vm1112_vm8 = vmmov %vm1108_vm0  ;;  %v723_v4 = vunpack.i.h.bf16 %v987_v35 }
  0xb3   :  { %v737_v58 = vunpack.i.l.bf16 %v736_v54  ;;  %v733_v59 = vunpack.i.h.bf16 %v731_v55  ;;  %v732_v0 = vunpack.i.l.bf16 %v731_v55  ;;  %v314_v2 = vpack.c.bf16 %v306_v56, %v306_v56  ;;  %500 = vmatpush1.bf16.msra.mxu1 %v404_v62  ;;  %vm1113_vm0 = vmmov %vm1109_vm1 }
  0xb4   :  { %v414_v3 = vsel %vm1112_vm8, %v236_v51, %v965_v63  ;;  %v363_v13 = vrot.slane %v315_v50, 4  ;;  %v310_v8 = vsel %vm891_vm7, %v250_v32, %v292_v52  ;;  %v738_v19 = vunpack.i.h.bf16 %v736_v54  ;;  %vm1114_vm1 = vmmov %vm1110_vm4 }
  0xb5   :  { %v188_v37 = vsel %vm187_vm10, %v737_v58, %v727_v40  ;;  %v272_v6 = vsel %vm270_vm2, %v732_v0, %v733_v59  ;;  %v311_v63 = vsel %vm874_vm3, %v980_v17, %v293_v31  ;;  %v362_v25 = vrot.slane %v314_v2, 4  ;;  %vm1115_vm3 = vmmov %vm1113_vm0 }
  0xb6   :  { %v235_v5 = vpack.c.bf16 %v188_v37, %v188_v37  ;;  %v746_v7 = vpop.permute.xlu1 %745  ;;  %v741_v12 = vpop.permute.xlu0 %740  ;;  %v319_v14 = vpack.c.bf16 %v272_v6, %v272_v6  ;;  %v424_v22 = vsel %vm1113_vm0, %v414_v3, %v363_v13  ;;  %v322_v38 = vpack.c.bf16 %v310_v8, %v310_v8  ;;  %vm1117_vm7 = vmmov %vm1114_vm1  ;;  %v441_v6 = vld [vmem:[%s1083_s1] sm:$0xf] }
  0xb7   :  { %v747_v15 = vunpack.i.l.bf16 %v746_v7  ;;  %v743_v18 = vunpack.i.h.bf16 %v741_v12  ;;  %v742_v21 = vunpack.i.l.bf16 %v741_v12  ;;  %v748_v29 = vunpack.i.h.bf16 %v746_v7 }
  0xb8   :  { %v371_v20 = vrot.slane %v319_v14, 2  ;;  %v411_v28 = vsel %vm1114_vm1, %v235_v5, %v977_v16  ;;  %v356_v53 = vrot.slane %v241_v60, 6  ;;  %v357_v54 = vrot.slane %v242_v61, 6 }
  0xb9   :  { %v271_v24 = vsel %vm270_vm2, %v747_v15, %v732_v0  ;;  %v260_v36 = vsel %vm249_vm5, %v743_v18, %v718_v1  ;;  %v261_v26 = vsel %vm249_vm5, %v718_v1, %v742_v21  ;;  %v422_v40 = vsel %vm1115_vm3, %v411_v28, %v362_v25  ;;  %vm1116_vm5 = vmmov %vm1114_vm1 }
  0xba   :  { %v318_v30 = vpack.c.bf16 %v271_v24, %v271_v24  ;;  %v756_v34 = vpop.permute.xlu1 %755  ;;  %v751_v35 = vpop.permute.xlu0 %750  ;;  %v433_v17 = vsel %vm396_vm11, %v424_v22, %v371_v20  ;;  %v323_v56 = vpack.c.bf16 %v311_v63, %v311_v63  ;;  %v447_v0 = vsel %vm1117_vm7, %v322_v38, 0 }
  0xbb   :  { %v758_v39 = vunpack.i.h.bf16 %v756_v34  ;;  %v757_v41 = vunpack.i.l.bf16 %v756_v34  ;;  %v753_v42 = vunpack.i.h.bf16 %v751_v35  ;;  %v752_v43 = vunpack.i.l.bf16 %v751_v35  ;;  %460 = vmatprep.subr.bf16.mxu0 %v433_v17 }
  0xbc   :  { %v370_v31 = vrot.slane %v318_v30, 2 }
  0xbd   :  { %v198_v16 = vsel %vm187_vm10, %v758_v39, %v738_v19  ;;  %v199_v44 = vsel %vm187_vm10, %v738_v19, %v757_v41  ;;  %v302_v45 = vsel %vm291_vm9, %v753_v42, %v723_v4  ;;  %v303_v33 = vsel %vm291_vm9, %v723_v4, %v752_v43  ;;  %vm1118_vm9 = vmmov %vm1114_vm1 }
  0xbe   :  { %v237_v46 = vpack.c.bf16 %v198_v16, %v198_v16  ;;  %v238_v47 = vpack.c.bf16 %v199_v44, %v199_v44  ;;  %v308_v48 = vsel %vm940_vm15, %v302_v45, %v260_v36  ;;  %v309_v32 = vsel %vm930_vm14, %v303_v33, %v261_v26  ;;  %v761_v27 = vpop.permute.xlu0 %760  ;;  %vm1119_vm10 = vmmov %vm1114_vm1 }
  0xbf   :  { %v316_v49 = vpack.c.bf16 %v308_v48, %v308_v48  ;;  %v317_v50 = vpack.c.bf16 %v309_v32, %v309_v32  ;;  %v763_v51 = vunpack.i.h.bf16 %v761_v27  ;;  %v762_v52 = vunpack.i.l.bf16 %v761_v27  ;;  %vm1120_vm14 = vmmov %vm1113_vm0 }
  0xc0   :  { %v430_v55 = vsel %vm396_vm11, %v422_v40, %v370_v31  ;;  %v420_v1 = vsel %vm1118_vm9, %v238_v47, %v357_v54  ;;  %v417_v60 = vsel %vm1119_vm10, %v237_v46, %v356_v53  ;;  %v313_v37 = vsel %vm926_vm13, %v261_v26, %v303_v33  ;;  %vm1121_vm15 = vmmov %vm1113_vm0  ;;  %v558_v40 = vld [vmem:[%s1084_s2] sm:$0xff]  ;;  %s792_s2 = scalar_lea.vmem %s598_s17, 512 }
  0xc1   :  { %v281_v57 = vsel %vm270_vm2, %v763_v51, %v748_v29  ;;  %v282_v58 = vsel %vm270_vm2, %v748_v29, %v762_v52  ;;  %461 = vmatpush1.bf16.msra.mxu0 %v430_v55  ;;  %v365_v23 = vrot.slane %v317_v50, 4  ;;  %v364_v59 = vrot.slane %v316_v49, 4  ;;  %vm1123_vm13 = vmmov %vm1114_vm1  ;;  %p793_p8 = scmp.ne.s32.totalorder %s598_s17, %s792_s2  ;;  %p798_p10 = scmp.lt.s32.totalorder %s792_s2, %s792_s2 }
  0xc2   :  { %v320_v62 = vpack.c.bf16 %v281_v57, %v281_v57  ;;  %v321_v11 = vpack.c.bf16 %v282_v58, %v282_v58  ;;  %609 = vmatprep.subr.msk.bf16.mxu0 %vm1116_vm5, %v323_v56  ;;  %v312_v3 = vsel %vm922_vm12, %v260_v36, %v302_v45  ;;  %vm442_vm2 = vcmask 293888   ;;  %vm1122_vm12 = vmmov %vm1114_vm1  ;;  %v562_v45 = vld [vmem:[%s1085_s3] sm:$0xff] }
  0xc3   :  { %v428_v4 = vsel %vm1120_vm14, %v420_v1, %v365_v23  ;;  %v426_v5 = vsel %vm1121_vm15, %v417_v60, %v364_v59  ;;  %v325_v10 = vpack.c.bf16 %v313_v37, %v313_v37  ;;  %v324_v13 = vpack.c.bf16 %v312_v3, %v312_v3  ;;  %p799_p11 = por %p798_p10, %p797_p9 }
  0xc4   :  { %v373_v61 = vrot.slane %v321_v11, 2  ;;  %v372_v2 = vrot.slane %v320_v62, 2 }
  0xc5   :  { %463 = vmatpush1.bf16.msra.mxu0 %v447_v0  ;;  %v453_v9 = vsel %vm1123_vm13, %v324_v13, 0  ;;  %p800_p12 = pnand %p799_p11, %p793_p8 }
  0xc6   :  { %v439_v7 = vsel %vm396_vm11, %v428_v4, %v373_v61  ;;  %v436_v12 = vsel %vm396_vm11, %v426_v5, %v372_v2 }
  0xc7   :  { %501 = vmatprep.subr.bf16.mxu1 %v439_v7 }
  0xc8   :  { %502 = vmatpush1.bf16.msra.mxu1 %v436_v12  ;;  %610 = vmatmul.mubr.msk.bf16.vlgmr.msra.gmra.mrb[0].mxu0 %vm442_vm2, %v441_v6 }
  0xc9   :  { %611 = vmatprep.subr.msk.bf16.mxu1 %vm1122_vm12, %v325_v10 }
  0xcc   :  { %504 = vmatpush1.bf16.msra.mxu1 %v453_v9 }
  0xcf   :  { %612 = vmatmul.mubr.msk.bf16.vlgmr.msra.gmra.mrb[0].mxu1 %vm442_vm2, %v441_v6 }
 0x19b   :  { %v492_v14 = vpop.f32.mrb[0].mxu0 }
 0x19c   :  { %v546_v15 = vmul.f32 %v492_v14, %v492_v14  ;;  %v494_v18 = vpop.f32.mrb[1].mxu0 }
 0x19d   :  { %v540_v8 = vadd.f32 %v494_v18, %v492_v14  ;;  %v547_v19 = vmul.f32 %v494_v18, %v494_v18  ;;  %v496_v21 = vpop.f32.mrb[2].mxu0 }
 0x19e   :  { %v497_v22 = vpop.f32.mrb[3].mxu0 }
 0x19f   :  { %v550_v63 = vadd.f32 %v547_v19, %v546_v15 }
 0x1a2   :  { %v533_v24 = vpop.f32.mrb[0].mxu1 }
 0x1a3   :  { %v548_v20 = vmul.f32 %v533_v24, %v533_v24  ;;  %v535_v25 = vpop.f32.mrb[1].mxu1  ;;  %v541_v28 = vadd.f32 %v540_v8, %v533_v24 }
 0x1a4   :  { %v537_v29 = vpop.f32.mrb[2].mxu1  ;;  %v549_v30 = vmul.f32 %v535_v25, %v535_v25 }
 0x1a5   :  { %v538_v36 = vpop.f32.mrb[3].mxu1  ;;  %v542_v34 = vadd.f32 %v541_v28, %v535_v25  ;;  %v551_v35 = vadd.f32 %v550_v63, %v548_v20 }
 0x1a7   :  { %543 = vadd.xlane.f32.xlu1 %v542_v34  ;;  %v552_v38 = vadd.f32 %v551_v35, %v549_v30 }
 0x1a9   :  { %553 = vadd.xlane.f32.xlu0 %v552_v38 }
 0x234   :  { %v544_v39 = vpop.xlane.xlu1 %543 }
 0x235   :  { %v545_v41 = vmul.f32 0.001953125, %v544_v39 }
 0x236   :  { %v554_v42 = vpop.xlane.xlu0 %553 }
 0x237   :  { %v556_v43 = vmul.f32 %v545_v41, %v545_v41  ;;  %v555_v26 = vmul.f32 0.001953125, %v554_v42 }
 0x239   :  { %v557_v17 = vsub.f32 %v555_v26, %v556_v43 }
 0x23b   :  { %v559_v31 = vadd.f32 1e-05, %v557_v17 }
 0x23d   :  { %768 = vrsqrt.f32 %v559_v31 }
 0x247   :  { %v769_v16 = vpop.eup %768 }
 0x248   :  { %v561_v44 = vmul.f32 %v769_v16, %v558_v40 }
 0x24a   :  { %567 = vperm.xlu0 %764, %v561_v44   ;;  %v563_v33 = vmul.f32 %v561_v44, %v545_v41 }
 0x24c   :  { %v564_v46 = vsub.f32 %v562_v45, %v563_v33 }
 0x24e   :  { %576 = vperm.xlu1 %765, %v564_v46  }
 0x2c9   :  { %v568_v47 = vpop.permute.xlu0 %567 }
 0x2ca   :  { %v570_v48 = vmul.f32 %v568_v47, %v492_v14  ;;  %v571_v32 = vmul.f32 %v568_v47, %v494_v18  ;;  %v572_v27 = vmul.f32 %v568_v47, %v533_v24  ;;  %v573_v49 = vmul.f32 %v568_v47, %v535_v25 }
 0x2cd   :  { %v577_v50 = vpop.permute.xlu1 %576 }
 0x2ce   :  { %v579_v51 = vadd.f32 %v577_v50, %v570_v48  ;;  %v580_v52 = vadd.f32 %v577_v50, %v571_v32  ;;  %v581_v53 = vadd.f32 %v577_v50, %v572_v27  ;;  %v582_v54 = vadd.f32 %v577_v50, %v573_v49 }
 0x2d0   :  { %v583_v55 = vmax.f32 %v579_v51, 0.0  ;;  %v584_v56 = vmax.f32 %v580_v52, 0.0  ;;  %v585_v57 = vmax.f32 %v581_v53, 0.0  ;;  %v586_v58 = vmax.f32 %v582_v54, 0.0 }
 0x2d2   :  { %587 = vst [vmem:[#allocation5] sm:$0xff] %v583_v55  ;;  %588 = vst [vmem:[#allocation5 + $0x8] sm:$0xff] %v584_v56 }
 0x2d3   :  { %590 = vst [vmem:[#allocation5 + $0x10] sm:$0xff] %v585_v57  ;;  %591 = vst [vmem:[#allocation5 + $0x18] sm:$0xff] %v586_v58 }
 0x2d4   :  { %803 = shalt.err (!%p800_p12)
}
 0x2d5   :  { %s804_s19 = scalar_lea.hbm %s1086_s4, 512 }
 0x2d6   :  { %p805_p13 = scmp.ne.s32.totalorder %s1086_s4, %s804_s19  ;;  %p808_p0 = scmp.lt.u32.totalorder %s804_s19, %s1086_s4 }
 0x2d8   :  { %p810_p1 = pnand %p808_p0, %p805_p13 }
 0x2da   :  { %813 = shalt.err (!%p810_p1)
}
 0x2db   :  { %s832_s24 = smov 256   ;;  %s833_s25 = smov 16  }
 0x2dc   :  { %603 = dma.vmem_to_hbm [thread:$0]  %s598_s17, 512, %s1086_s4, [#allocation4], %s832_s24, %s832_s24, %s833_s25  }
 0x2dd   :  { %816 = dma.done.wait [#allocation4], 512  }
 0x2de   :  { %817 = vsyncadd [#allocation4], 4294966784 }
 0x2df   :  { %607 = vsyncpa [#allocation3], 1 }
 0x2e0   :  { %608 = vsyncpa [#allocation4], 1 }

</bundles_post_ra>
